<compile_context>
chip_gen: v6e
topology: v6e:2x2x1
jax: 0.10.0
libtpu: 0.0.40
codegen_flags: <defaults>
</compile_context>

<pallas_src>
import functools

import jax
import jax.numpy as jnp
from jax.experimental import pallas as pl
from jax.experimental.pallas import tpu as pltpu


def _dequant_kernel(x_ref, w_ref, o_ref, *, offset, valid_k):
    # x_ref: (tb, tn*B) raw interleaved bits     w_ref: (tn*B, tn) bf16 block-diag
    # o_ref: (tb, tn) out_dtype
    bits = x_ref[...].astype(jnp.bfloat16)
    if valid_k is not None:
        # Ragged N tail: zero the out-of-bounds contraction columns so stale
        # VMEM garbage (possibly NaN/Inf) cannot contaminate valid outputs
        # through the zero entries of the block-diagonal weights.
        j = pl.program_id(1)
        k_global = j * x_ref.shape[-1] + jax.lax.broadcasted_iota(
            jnp.int32, bits.shape, 1
        )
        bits = jnp.where(k_global < valid_k, bits, jnp.bfloat16(0))
    acc = jnp.dot(bits, w_ref[...], preferred_element_type=jnp.float32)
    o_ref[...] = (acc + offset).astype(o_ref.dtype)


def _block_diag_weights(tn, B):
    """(tn*B, tn) bf16 with W[g*B + i, g] = 2^-(i+1); zeros elsewhere."""
    w = 2.0 ** -jnp.arange(1, B + 1, dtype=jnp.float32)            # (B,)
    eye = jnp.eye(tn, dtype=jnp.float32)                           # (tn, tn)
    W = (eye[:, None, :] * w[None, :, None]).reshape(tn * B, tn)   # (tn*B, tn)
    return W.astype(jnp.bfloat16)


def _sublane_multiple(dtype):
    return max(8, 32 // jnp.dtype(dtype).itemsize)   # f32: 8, bf16: 16, int8: 32


def dequantization_layer(x, B, *, block_batch=1024, block_n=256,
                         out_dtype=jnp.float32):
    """JAX/Pallas equivalent of DequantizationLayer(B).forward(x).

    x: (batch, N*B) array of 0/1 bits (f32 / bf16 / int8 / bool).
    Returns (batch, N) in out_dtype (f32 default; bf16 exact for B <= 7).
    """
    assert x.ndim == 2, "expected (batch, N*B)"
    batch, nb = x.shape
    assert nb % B == 0, "feature dim must be a multiple of B"
    n = nb // B
    itemsize = jnp.dtype(x.dtype).itemsize
    out_itemsize = jnp.dtype(out_dtype).itemsize

    # ---- N tiling: lane-dense 128-multiple tile (or full dim), capped so the
    #      block-diagonal weight / MXU work stays small. ----------------------
    tn_pref = max(128, min((block_n // 128) * 128, 512))
    tn = n if n <= tn_pref else tn_pref

    # ---- VMEM budget (per-generation) and batch tile ------------------------
    try:
        vmem_cap = int(getattr(pltpu.get_tpu_info(), "vmem_capacity_bytes"))
    except Exception:
        vmem_cap = 64 * 1024 * 1024
    budget = min(int(vmem_cap * 0.7), 96 * 1024 * 1024)

    w_bytes = 2 * (tn * B) * tn * 2                       # bf16 weight, x2 buffers
    per_row = 2 * tn * (B * itemsize + out_itemsize)      # in+out, double-buffered
    slack = 4 * 1024 * 1024
    tb_cap = max(8, (budget - w_bytes - slack) // per_row)

    sub = max(_sublane_multiple(x.dtype), _sublane_multiple(out_dtype))
    if batch <= sub:
        tb = batch                                        # full dim: always legal
    else:
        tb = int(min(block_batch, tb_cap, batch))
        tb = max(sub, (tb // sub) * sub)

    grid_b = pl.cdiv(batch, tb)
    grid_n = pl.cdiv(n, tn)

    # ---- guarantee >= 2 parallel blocks for v7x's two TensorCores -----------
    if grid_b * grid_n == 1 and batch >= 2 * sub:
        half = (batch + 1) // 2
        tb = ((half + sub - 1) // sub) * sub
        grid_b = pl.cdiv(batch, tb)

    W = _block_diag_weights(tn, B)
    valid_k = (n * B) if (n % tn != 0) else None

    cost = pl.CostEstimate(
        flops=2 * batch * n * B * tn,                     # MXU flops actually issued
        transcendentals=0,
        bytes_accessed=batch * n * B * itemsize + batch * n * out_itemsize,
    )

    kernel = functools.partial(
        _dequant_kernel, offset=float(2.0 ** -(B + 1)), valid_k=valid_k
    )
    return pl.pallas_call(
        kernel,
        out_shape=jax.ShapeDtypeStruct((batch, n), out_dtype),
        grid=(grid_b, grid_n),
        in_specs=[
            pl.BlockSpec((tb, tn * B), lambda i, j: (i, j)),
            pl.BlockSpec((tn * B, tn), lambda i, j: (0, 0)),   # resident constant
        ],
        out_specs=pl.BlockSpec((tb, tn), lambda i, j: (i, j)),
        compiler_params=pltpu.CompilerParams(
            dimension_semantics=("parallel", "parallel"),
            vmem_limit_bytes=budget,
        ),
        cost_estimate=cost,
    )(x, W)


def _reference(x, B):
    """Pure-JAX reference mirroring the PyTorch forward exactly."""
    xf = x.astype(jnp.float32)
    n = xf.shape[1] // B
    x3 = xf.reshape(-1, n, B)
    weights = 2.0 ** (B - 1 - jnp.arange(B, dtype=jnp.float32))
    num = jnp.sum(x3 * weights, axis=-1)
    return (num + 0.5) / (2.0 ** B)


if __name__ == "__main__":
    key = jax.random.PRNGKey(0)

    # --- small shape matching the module convention -------------------------
    B = 4
    batch, n = 2, 32                      # x: (2, 128) bits
    x = jax.random.bernoulli(key, 0.5, (batch, n * B)).astype(jnp.float32)
    out = jax.block_until_ready(dequantization_layer(x, B))
    ref = _reference(x, B)
    assert out.shape == (batch, n) and out.dtype == jnp.float32
    assert jnp.allclose(out, ref, atol=1e-6, rtol=0)

    # bf16 output is exact for B <= 7 (halves output write traffic)
    out_bf16 = jax.block_until_ready(
        dequantization_layer(x, B, out_dtype=jnp.bfloat16)
    )
    assert jnp.allclose(out_bf16.astype(jnp.float32), ref, atol=1e-6, rtol=0)

    # --- tiled grid with int8 bit storage (4x less HBM read than f32) -------
    b2, n2 = 10, 256
    x2 = jax.random.bernoulli(
        jax.random.PRNGKey(1), 0.5, (b2, n2 * B)
    ).astype(jnp.int8)
    out2 = jax.block_until_ready(
        dequantization_layer(x2, B, block_batch=8, block_n=128)
    )
    assert jnp.allclose(out2, _reference(x2, B), atol=1e-6, rtol=0)

    # --- ragged N tail (n not a multiple of the 128-lane tile) ---------------
    b3, n3 = 16, 200
    x3 = jax.random.bernoulli(
        jax.random.PRNGKey(2), 0.5, (b3, n3 * B)
    ).astype(jnp.float32)
    out3 = jax.block_until_ready(dequantization_layer(x3, B, block_n=128))
    assert out3.shape == (b3, n3)
    assert jnp.allclose(out3, _reference(x3, B), atol=1e-6, rtol=0)

    # --- single-tile problem split into >=2 parallel blocks (v7x megacore),
    #     bf16 bit storage, B=8 -----------------------------------------------
    b4, n4, B4 = 64, 256, 8
    x4 = jax.random.bernoulli(
        jax.random.PRNGKey(3), 0.5, (b4, n4 * B4)
    ).astype(jnp.bfloat16)
    out4 = jax.block_until_ready(dequantization_layer(x4, B4))
    assert jnp.allclose(out4, _reference(x4, B4), atol=1e-6, rtol=0)

    print("KERNEL_OK")
</pallas_src>

<mosaic_0001>
module attributes {stable_mosaic.version = 11 : i64} {
  func.func @_dequant_kernel(%arg0: i32, %arg1: i32, %arg2: memref<2x128xf32, #tpu.memory_space<vmem>>, %arg3: memref<128x32xbf16, #tpu.memory_space<vmem>>, %arg4: memref<2x32xf32, #tpu.memory_space<vmem>>) attributes {dimension_semantics = [#tpu.dimension_semantics<parallel>, #tpu.dimension_semantics<parallel>], iteration_bounds = array<i64: 1, 1>, scalar_prefetch = 0 : i64, scratch_operands = 0 : i64, tpu.core_type = #tpu.core_type<tc>, window_params = [{transform_indices = @transform_0, window_bounds = array<i64: 2, 128>}, {pipeline_mode = #tpu.pipeline_mode<synchronous>, transform_indices = @transform_1, window_bounds = array<i64: 128, 32>}, {transform_indices = @transform_2, window_bounds = array<i64: 2, 32>}]} {
    %c0 = arith.constant 0 : index
    %c0_0 = arith.constant 0 : index
    %0 = vector.load %arg2[%c0, %c0_0] : memref<2x128xf32, #tpu.memory_space<vmem>>, vector<2x128xf32>
    %1 = arith.truncf %0 : vector<2x128xf32> to vector<2x128xbf16>
    %c0_1 = arith.constant 0 : index
    %c0_2 = arith.constant 0 : index
    %2 = vector.load %arg3[%c0_1, %c0_2] : memref<128x32xbf16, #tpu.memory_space<vmem>>, vector<128x32xbf16>
    %cst = arith.constant dense<0.000000e+00> : vector<2x32xf32>
    %3 = tpu.matmul %1, %2, %cst {dimension_numbers = #tpu.dot_dimension_numbers<[1], [0], [0], [1], [0, 0, 1, 1], [], []>} : vector<2x128xbf16>, vector<128x32xbf16>, vector<2x32xf32> -> vector<2x32xf32>
    %cst_3 = arith.constant 3.125000e-02 : f32
    %4 = vector.broadcast %cst_3 : f32 to vector<2x32xf32>
    %5 = arith.addf %3, %4 : vector<2x32xf32>
    %c0_4 = arith.constant 0 : index
    %c0_5 = arith.constant 0 : index
    %6 = vector.load %arg4[%c0_4, %c0_5] : memref<2x32xf32, #tpu.memory_space<vmem>>, vector<2x32xf32>
    tpu.vector_store %arg4[%c0_4, %c0_5], %5 {strides = array<i32>} : memref<2x32xf32, #tpu.memory_space<vmem>>, vector<2x32xf32>,
    return
  }
  func.func @transform_0(%arg0: i32, %arg1: i32) -> (i32, i32) {
    %c0_i32 = arith.constant 0 : i32
    return %arg0, %arg1 : i32, i32
  }
  func.func @transform_1(%arg0: i32, %arg1: i32) -> (i32, i32) {
    %c0_i32 = arith.constant 0 : i32
    %c0_i32_0 = arith.constant 0 : i32
    %c0_i32_1 = arith.constant 0 : i32
    return %c0_i32, %c0_i32_0 : i32, i32
  }
  func.func @transform_2(%arg0: i32, %arg1: i32) -> (i32, i32) {
    %c0_i32 = arith.constant 0 : i32
    return %arg0, %arg1 : i32, i32
  }
}

</mosaic_0001>

<bundles_post_ra>
// kernel: tpu_custom_call.1
= control target key start
LH: loop header
LB: loop body
LE: loop exit
PB: predicated region body
PF: predicated region fallthrough
CT: control target
= control target key end

     0   :  { %v205_v1 = vmov 0.0   ;;  %vm206_vm0 = vmmov 0   ;;  %s253_s0 = inlined_call_operand.vmem [shape: f32[2,128], index: 0, kind: input, shape index: {}]   ;;  %s254_s1 = inlined_call_operand.vmem [shape: bf16[128,32], index: 1, kind: input, shape index: {}]   ;;  %s255_s2 = inlined_call_operand.hbm [shape: f32[2,32], index: 2, kind: output, shape index: {}]  }
   0x1   :  { %v175_v0 = vld [vmem:[%s254_s1 + $0x38] sm:$0xff]   ;;  %152 = vmatprep.subr.bf16.mxu0 %v205_v1  ;;  %v176_v2 = vld [vmem:[%s254_s1 + $0x30] sm:$0xff]   ;;  %168 = vmatprep.mubr.msk.bf16.mxu0 %vm206_vm0, %v205_v1  ;;  %v177_v3 = vld [vmem:[%s254_s1 + $0x28] sm:$0xff]  }
   0x2   :  { %153 = vmatpush3.bf16.msra.mxu0 %v175_v0 }
   0x3   :  { %154 = vmatprep.subr.bf16.mxu0 %v205_v1 }
   0x6   :  { %155 = vmatpush3.bf16.msra.mxu0 %v176_v2 }
   0x7   :  { %156 = vmatprep.subr.bf16.mxu0 %v205_v1 }
   0x8   :  { %7 = vsyncpa [#allocation3], 0  ;;  %v178_v4 = vld [vmem:[%s254_s1 + $0x20] sm:$0xff]   ;;  %v179_v5 = vld [vmem:[%s254_s1 + $0x18] sm:$0xff]   ;;  %s207_s27 = smov [#allocation2]   ;;  %vm119_vm1 = vcmask 254976  }
   0x9   :  { %v180_v6 = vld [vmem:[%s254_s1 + $0x10] sm:$0xff]   ;;  %v181_v7 = vld [vmem:[%s254_s1 + $0x8] sm:$0xff]   ;;  %v182_v8 = vld [vmem:[%s254_s1] sm:$0xff]   ;;  %s127_s28 = sshll.u32 %s207_s27, 4  ;;  %s128_s28 = int_to_ptr.vmem [resolvable:$true] %s127_s28 }
   0xa   :  { %157 = vmatpush3.bf16.msra.mxu0 %v177_v3  ;;  %v13_v9 = vld [vmem:[%s253_s0] sm:$0x3]  ;;  %s183_s29 = scalar_lea.vmem %s128_s28, 32  ;;  %p188_p1 = scmp.lt.s32.totalorder %s128_s28, %s128_s28 }
   0xb   :  { %158 = vmatprep.subr.bf16.mxu0 %v205_v1  ;;  %v14_v10 = vpack.c.bf16 %v13_v9, %v13_v9  ;;  %p184_p0 = scmp.ne.s32.totalorder %s128_s28, %s183_s29  ;;  %p189_p2 = scmp.lt.s32.totalorder %s183_s29, %s183_s29 }
   0xd   :  { %p190_p3 = por %p189_p2, %p188_p1 }
   0xe   :  { %159 = vmatpush3.bf16.msra.mxu0 %v178_v4 }
   0xf   :  { %160 = vmatprep.subr.bf16.mxu0 %v205_v1  ;;  %p191_p4 = pnand %p190_p3, %p184_p0 }
  0x12   :  { %161 = vmatpush3.bf16.msra.mxu0 %v179_v5 }
  0x13   :  { %162 = vmatprep.subr.bf16.mxu0 %v205_v1 }
  0x16   :  { %163 = vmatpush3.bf16.msra.mxu0 %v180_v6 }
  0x17   :  { %164 = vmatprep.subr.bf16.mxu0 %v205_v1 }
  0x1a   :  { %165 = vmatpush3.bf16.msra.mxu0 %v181_v7 }
  0x1b   :  { %166 = vmatprep.subr.bf16.mxu0 %v205_v1 }
  0x1e   :  { %167 = vmatpush3.bf16.msra.mxu0 %v182_v8 }
  0x21   :  { %169 = vmatmul.mubr.bf16.vlgmr.msra.gmra.mxu0 %v14_v10 }
  0xe1   :  { %v113_v11 = vpop.f32.mrf.mxu0 }
  0xe2   :  { %v114_v12 = vadd.f32 0.03125, %v113_v11 }
  0xe3   :  { %v170_v13 = vpop.f32.mrf.mxu0 }
  0xe4   :  { %120 = vst.msk [vmem:[#allocation2] sm:$0x3] %vm119_vm1, %v114_v12 }
  0xe5   :  { %v116_v14 = vpop.f32.mrf.mxu0 }
  0xe6   :  { %194 = shalt.err (!%p191_p4)
}
  0xe7   :  { %130 = dma.vmem_to_hbm [thread:$0]  %s128_s28, 32, %s255_s2, [#allocation3]   ;;  %v171_v15 = vpop.f32.mrf.mxu0 }
  0xe8   :  { %203 = dma.done.wait [#allocation3], 32  }
  0xe9   :  { %204 = vsyncadd [#allocation3], 4294967264 }
  0xea   :  { %134 = vsyncpa [#allocation3], 1 }

</bundles_post_ra>
